<compile_context>
chip_gen: v7x
topology: tpu7x:2x2x1
jax: 0.10.0
libtpu: 0.0.40
codegen_flags: <defaults>
</compile_context>

<pallas_src>
import jax
import jax.numpy as jnp
from jax.experimental import pallas as pl
from jax.experimental.pallas import tpu as pltpu

EPS = 1e-5


def _linear_bn_noise_kernel(x_ref,
                            w1_ref, g1_ref, be1_ref,
                            w2_ref, g2_ref, be2_ref,
                            w3_ref, b3_ref,
                            z1_ref, z2_ref,
                            u1_ref, u2_ref,
                            o_ref):

    def bn_noise_relu(h, gamma, beta, z, u):
        B, F = h.shape
        # --- BatchNorm1d (training mode), one-pass per-feature stats ---
        colsum = jnp.sum(h, axis=0, keepdims=True)            # (1, F)
        colsq = jnp.sum(h * h, axis=0, keepdims=True)         # (1, F)
        mu = colsum * (1.0 / B)
        var = colsq * (1.0 / B) - mu * mu                     # biased variance
        scale = gamma * jax.lax.rsqrt(var + EPS)
        shift = beta - mu * scale
        h = h * scale + shift                                  # folded affine
        # --- data-dependent noise: N(mean(h), std(h) * u), one-pass stats ---
        n = B * F
        tsum = jnp.sum(h)
        tsq = jnp.sum(h * h)
        m = tsum * (1.0 / n)
        s = jnp.sqrt(jnp.maximum(tsq - n * m * m, 0.0) * (1.0 / (n - 1)))  # Bessel
        h = h + (m + s * u * z)                                # u: SMEM scalar
        return jnp.maximum(h, 0.0)                             # ReLU

    x = x_ref[...]

    # Layer 1: pre-BN bias omitted (cancels in training-mode BN).
    h1 = jnp.dot(x, w1_ref[...], preferred_element_type=jnp.float32)
    h1 = bn_noise_relu(h1, g1_ref[...], be1_ref[...], z1_ref[...], u1_ref[0])

    # Layer 2: pre-BN bias omitted (cancels in training-mode BN).
    h2 = jnp.dot(h1, w2_ref[...], preferred_element_type=jnp.float32)
    h2 = bn_noise_relu(h2, g2_ref[...], be2_ref[...], z2_ref[...], u2_ref[0])

    # Layer 3: lane-dense 128-wide store (w3/b3 zero-padded in the wrapper).
    o_ref[...] = jnp.dot(h2, w3_ref[...], preferred_element_type=jnp.float32) + b3_ref[...]


def linear_bn_noise_forward(inp, params, z1, z2, u1, u2):
    """inp: (B, 1, 28, 28) or (B, 784); returns (B, 10) float32."""
    B = inp.shape[0]
    x = inp.reshape(B, -1).astype(jnp.float32)   # inp.view(inp.size(0), -1)
    assert x.shape[1] == 784

    (w1, b1, g1, be1, w2, b2, g2, be2, w3, b3) = params
    del b1, b2  # constant pre-BN biases are exact no-ops under training-mode BN

    # Pad layer-1 contraction dim to a 128-lane multiple (784 -> 896).
    K_PAD = 896
    x_p = jnp.pad(x, ((0, 0), (0, K_PAD - 784)))
    w1_p = jnp.pad(w1, ((0, K_PAD - 784), (0, 0)))

    # Lane-dense output: pad last linear to 128 output lanes; slice after.
    N_PAD = 128
    w3_p = jnp.pad(w3, ((0, 0), (0, N_PAD - 10)))
    b3_p = jnp.pad(b3, (0, N_PAD - 10)).reshape(1, N_PAD)

    args = (
        x_p,
        w1_p, g1.reshape(1, -1), be1.reshape(1, -1),
        w2,   g2.reshape(1, -1), be2.reshape(1, -1),
        w3_p, b3_p,
        z1.astype(jnp.float32), z2.astype(jnp.float32),
        jnp.reshape(u1, (1,)).astype(jnp.float32),   # SMEM scalar
        jnp.reshape(u2, (1,)).astype(jnp.float32),   # SMEM scalar
    )

    vmem = pl.BlockSpec(memory_space=pltpu.MemorySpace.VMEM)
    smem = pl.BlockSpec(memory_space=pltpu.MemorySpace.SMEM)
    in_specs = [vmem] * 11 + [smem, smem]

    out = pl.pallas_call(
        _linear_bn_noise_kernel,
        out_shape=jax.ShapeDtypeStruct((B, N_PAD), jnp.float32),
        in_specs=in_specs,
        out_specs=vmem,
        # No grid: whole problem fits VMEM at this size (latency-bound).
    )(*args)
    return out[:, :10]


def linear_bn_noise_reference(inp, params, z1, z2, u1, u2):
    """Pure-JAX reference following the torch module literally (with biases)."""
    B = inp.shape[0]
    x = inp.reshape(B, -1).astype(jnp.float32)
    (w1, b1, g1, be1, w2, b2, g2, be2, w3, b3) = params

    def bn_noise_relu(h, gamma, beta, z, u):
        mu = jnp.mean(h, axis=0, keepdims=True)
        var = jnp.mean((h - mu) ** 2, axis=0, keepdims=True)       # biased
        h = (h - mu) * jax.lax.rsqrt(var + EPS) * gamma + beta
        m = jnp.mean(h)
        s = jnp.std(h, ddof=1)                                     # torch .std()
        h = h + (m + s * u * z)
        return jnp.maximum(h, 0.0)

    h1 = bn_noise_relu(x @ w1 + b1, g1, be1, z1, u1)
    h2 = bn_noise_relu(h1 @ w2 + b2, g2, be2, z2, u2)
    return h2 @ w3 + b3


def init_params(key):
    """Deterministic init mimicking nn.Linear defaults (uniform +/- 1/sqrt(fan_in))
    and BatchNorm1d defaults (gamma=1, beta=0). Linear weights stored transposed
    as (in_features, out_features)."""
    ks = jax.random.split(key, 6)

    def lin(kw, kb, fan_in, fan_out):
        bound = 1.0 / (fan_in ** 0.5)
        w = jax.random.uniform(kw, (fan_in, fan_out), jnp.float32, -bound, bound)
        b = jax.random.uniform(kb, (fan_out,), jnp.float32, -bound, bound)
        return w, b

    w1, b1 = lin(ks[0], ks[1], 784, 48)
    w2, b2 = lin(ks[2], ks[3], 48, 24)
    w3, b3 = lin(ks[4], ks[5], 24, 10)
    g1, be1 = jnp.ones((48,), jnp.float32), jnp.zeros((48,), jnp.float32)
    g2, be2 = jnp.ones((24,), jnp.float32), jnp.zeros((24,), jnp.float32)
    return (w1, b1, g1, be1, w2, b2, g2, be2, w3, b3)


if __name__ == "__main__":
    import numpy as np

    key = jax.random.PRNGKey(0)
    k_param, k_x, k_z1, k_z2, k_u1, k_u2 = jax.random.split(key, 6)

    params = init_params(k_param)

    B = 8
    x = jax.random.normal(k_x, (B, 1, 28, 28), jnp.float32)   # MNIST-like input

    # Randomness for the noise injection (deterministic via PRNGKey(0)).
    z1 = jax.random.normal(k_z1, (B, 48), jnp.float32)
    z2 = jax.random.normal(k_z2, (B, 24), jnp.float32)
    u1 = jax.random.uniform(k_u1, (), jnp.float32, 1.0, 2.0)
    u2 = jax.random.uniform(k_u2, (), jnp.float32, 1.0, 2.0)

    out = linear_bn_noise_forward(x, params, z1, z2, u1, u2)
    out = jax.block_until_ready(out)
    assert out.shape == (B, 10) and out.dtype == jnp.float32

    ref = jax.block_until_ready(
        linear_bn_noise_reference(x, params, z1, z2, u1, u2))
    np.testing.assert_allclose(np.asarray(out), np.asarray(ref),
                               rtol=5e-2, atol=5e-2)

    print("KERNEL_OK")
</pallas_src>

<mosaic_0001>
module attributes {stable_mosaic.version = 11 : i64} {
  func.func @_linear_bn_noise_kernel(%arg0: memref<8x896xf32, #tpu.memory_space<vmem>>, %arg1: memref<896x48xf32, #tpu.memory_space<vmem>>, %arg2: memref<1x48xf32, #tpu.memory_space<vmem>>, %arg3: memref<1x48xf32, #tpu.memory_space<vmem>>, %arg4: memref<48x24xf32, #tpu.memory_space<vmem>>, %arg5: memref<1x24xf32, #tpu.memory_space<vmem>>, %arg6: memref<1x24xf32, #tpu.memory_space<vmem>>, %arg7: memref<24x128xf32, #tpu.memory_space<vmem>>, %arg8: memref<1x128xf32, #tpu.memory_space<vmem>>, %arg9: memref<8x48xf32, #tpu.memory_space<vmem>>, %arg10: memref<8x24xf32, #tpu.memory_space<vmem>>, %arg11: memref<1xf32, #tpu.memory_space<smem>>, %arg12: memref<1xf32, #tpu.memory_space<smem>>, %arg13: memref<8x128xf32, #tpu.memory_space<vmem>>) attributes {dimension_semantics = [], scalar_prefetch = 0 : i64, scratch_operands = 0 : i64, tpu.core_type = #tpu.core_type<tc>} {
    %c0 = arith.constant 0 : index
    %c0_0 = arith.constant 0 : index
    %0 = vector.load %arg0[%c0, %c0_0] : memref<8x896xf32, #tpu.memory_space<vmem>>, vector<8x896xf32>
    %c0_1 = arith.constant 0 : index
    %c0_2 = arith.constant 0 : index
    %1 = vector.load %arg1[%c0_1, %c0_2] : memref<896x48xf32, #tpu.memory_space<vmem>>, vector<896x48xf32>
    %cst = arith.constant dense<0.000000e+00> : vector<8x48xf32>
    %2 = tpu.matmul %0, %1, %cst {dimension_numbers = #tpu.dot_dimension_numbers<[1], [0], [0], [1], [0, 0, 1, 1], [], []>} : vector<8x896xf32>, vector<896x48xf32>, vector<8x48xf32> -> vector<8x48xf32>
    %c0_3 = arith.constant 0 : index
    %c0_4 = arith.constant 0 : index
    %3 = vector.load %arg2[%c0_3, %c0_4] : memref<1x48xf32, #tpu.memory_space<vmem>>, vector<1x48xf32>
    %c0_5 = arith.constant 0 : index
    %c0_6 = arith.constant 0 : index
    %4 = vector.load %arg3[%c0_5, %c0_6] : memref<1x48xf32, #tpu.memory_space<vmem>>, vector<1x48xf32>
    %c0_7 = arith.constant 0 : index
    %c0_8 = arith.constant 0 : index
    %5 = vector.load %arg9[%c0_7, %c0_8] : memref<8x48xf32, #tpu.memory_space<vmem>>, vector<8x48xf32>
    %c0_9 = arith.constant 0 : index
    %6 = memref.load %arg11[%c0_9] : memref<1xf32, #tpu.memory_space<smem>>
    %cst_10 = arith.constant dense<0.000000e+00> : vector<48xf32>
    %7 = vector.multi_reduction <add>, %2, %cst_10 [0] : vector<8x48xf32> to vector<48xf32>
    %8 = vector.shape_cast %7 : vector<48xf32> to vector<1x48xf32>
    %9 = arith.mulf %2, %2 : vector<8x48xf32>
    %cst_11 = arith.constant dense<0.000000e+00> : vector<48xf32>
    %10 = vector.multi_reduction <add>, %9, %cst_11 [0] : vector<8x48xf32> to vector<48xf32>
    %11 = vector.shape_cast %10 : vector<48xf32> to vector<1x48xf32>
    %cst_12 = arith.constant 1.250000e-01 : f32
    %12 = vector.broadcast %cst_12 : f32 to vector<1x48xf32>
    %13 = arith.mulf %8, %12 : vector<1x48xf32>
    %cst_13 = arith.constant 1.250000e-01 : f32
    %14 = vector.broadcast %cst_13 : f32 to vector<1x48xf32>
    %15 = arith.mulf %11, %14 : vector<1x48xf32>
    %16 = arith.mulf %13, %13 : vector<1x48xf32>
    %17 = arith.subf %15, %16 : vector<1x48xf32>
    %cst_14 = arith.constant 9.99999974E-6 : f32
    %18 = vector.broadcast %cst_14 : f32 to vector<1x48xf32>
    %19 = arith.addf %17, %18 : vector<1x48xf32>
    %20 = math.rsqrt %19 : vector<1x48xf32>
    %21 = arith.mulf %3, %20 : vector<1x48xf32>
    %22 = arith.mulf %13, %21 : vector<1x48xf32>
    %23 = arith.subf %4, %22 : vector<1x48xf32>
    %24 = vector.broadcast %21 : vector<1x48xf32> to vector<8x48xf32>
    %25 = arith.mulf %2, %24 : vector<8x48xf32>
    %26 = vector.broadcast %23 : vector<1x48xf32> to vector<8x48xf32>
    %27 = arith.addf %25, %26 : vector<8x48xf32>
    %28 = vector.shape_cast %27 : vector<8x48xf32> to vector<1x8x48xf32>
    %cst_15 = arith.constant dense<0.000000e+00> : vector<1xf32>
    %29 = vector.multi_reduction <add>, %28, %cst_15 [1, 2] : vector<1x8x48xf32> to vector<1xf32>
    %30 = vector.shape_cast %29 : vector<1xf32> to vector<1x1x1xf32>
    %31 = vector.extract %30[0, 0, 0] : f32 from vector<1x1x1xf32>
    %32 = arith.mulf %27, %27 : vector<8x48xf32>
    %33 = vector.shape_cast %32 : vector<8x48xf32> to vector<1x8x48xf32>
    %cst_16 = arith.constant dense<0.000000e+00> : vector<1xf32>
    %34 = vector.multi_reduction <add>, %33, %cst_16 [1, 2] : vector<1x8x48xf32> to vector<1xf32>
    %35 = vector.shape_cast %34 : vector<1xf32> to vector<1x1x1xf32>
    %36 = vector.extract %35[0, 0, 0] : f32 from vector<1x1x1xf32>
    %cst_17 = arith.constant 0.00260416674 : f32
    %37 = arith.mulf %31, %cst_17 : f32
    %cst_18 = arith.constant 3.840000e+02 : f32
    %38 = arith.mulf %cst_18, %37 : f32
    %39 = arith.mulf %38, %37 : f32
    %40 = arith.subf %36, %39 : f32
    %cst_19 = arith.constant 0.000000e+00 : f32
    %41 = arith.maximumf %40, %cst_19 : f32
    %cst_20 = arith.constant 0.0026109661 : f32
    %42 = arith.mulf %41, %cst_20 : f32
    %43 = math.sqrt %42 : f32
    %44 = arith.mulf %43, %6 : f32
    %45 = vector.broadcast %44 : f32 to vector<8x48xf32>
    %46 = arith.mulf %45, %5 : vector<8x48xf32>
    %47 = vector.broadcast %37 : f32 to vector<8x48xf32>
    %48 = arith.addf %47, %46 : vector<8x48xf32>
    %49 = arith.addf %27, %48 : vector<8x48xf32>
    %cst_21 = arith.constant 0.000000e+00 : f32
    %50 = vector.broadcast %cst_21 : f32 to vector<8x48xf32>
    %51 = arith.maximumf %49, %50 : vector<8x48xf32>
    %c0_22 = arith.constant 0 : index
    %c0_23 = arith.constant 0 : index
    %52 = vector.load %arg4[%c0_22, %c0_23] : memref<48x24xf32, #tpu.memory_space<vmem>>, vector<48x24xf32>
    %cst_24 = arith.constant dense<0.000000e+00> : vector<8x24xf32>
    %53 = tpu.matmul %51, %52, %cst_24 {dimension_numbers = #tpu.dot_dimension_numbers<[1], [0], [0], [1], [0, 0, 1, 1], [], []>} : vector<8x48xf32>, vector<48x24xf32>, vector<8x24xf32> -> vector<8x24xf32>
    %c0_25 = arith.constant 0 : index
    %c0_26 = arith.constant 0 : index
    %54 = vector.load %arg5[%c0_25, %c0_26] : memref<1x24xf32, #tpu.memory_space<vmem>>, vector<1x24xf32>
    %c0_27 = arith.constant 0 : index
    %c0_28 = arith.constant 0 : index
    %55 = vector.load %arg6[%c0_27, %c0_28] : memref<1x24xf32, #tpu.memory_space<vmem>>, vector<1x24xf32>
    %c0_29 = arith.constant 0 : index
    %c0_30 = arith.constant 0 : index
    %56 = vector.load %arg10[%c0_29, %c0_30] : memref<8x24xf32, #tpu.memory_space<vmem>>, vector<8x24xf32>
    %c0_31 = arith.constant 0 : index
    %57 = memref.load %arg12[%c0_31] : memref<1xf32, #tpu.memory_space<smem>>
    %cst_32 = arith.constant dense<0.000000e+00> : vector<24xf32>
    %58 = vector.multi_reduction <add>, %53, %cst_32 [0] : vector<8x24xf32> to vector<24xf32>
    %59 = vector.shape_cast %58 : vector<24xf32> to vector<1x24xf32>
    %60 = arith.mulf %53, %53 : vector<8x24xf32>
    %cst_33 = arith.constant dense<0.000000e+00> : vector<24xf32>
    %61 = vector.multi_reduction <add>, %60, %cst_33 [0] : vector<8x24xf32> to vector<24xf32>
    %62 = vector.shape_cast %61 : vector<24xf32> to vector<1x24xf32>
    %cst_34 = arith.constant 1.250000e-01 : f32
    %63 = vector.broadcast %cst_34 : f32 to vector<1x24xf32>
    %64 = arith.mulf %59, %63 : vector<1x24xf32>
    %cst_35 = arith.constant 1.250000e-01 : f32
    %65 = vector.broadcast %cst_35 : f32 to vector<1x24xf32>
    %66 = arith.mulf %62, %65 : vector<1x24xf32>
    %67 = arith.mulf %64, %64 : vector<1x24xf32>
    %68 = arith.subf %66, %67 : vector<1x24xf32>
    %cst_36 = arith.constant 9.99999974E-6 : f32
    %69 = vector.broadcast %cst_36 : f32 to vector<1x24xf32>
    %70 = arith.addf %68, %69 : vector<1x24xf32>
    %71 = math.rsqrt %70 : vector<1x24xf32>
    %72 = arith.mulf %54, %71 : vector<1x24xf32>
    %73 = arith.mulf %64, %72 : vector<1x24xf32>
    %74 = arith.subf %55, %73 : vector<1x24xf32>
    %75 = vector.broadcast %72 : vector<1x24xf32> to vector<8x24xf32>
    %76 = arith.mulf %53, %75 : vector<8x24xf32>
    %77 = vector.broadcast %74 : vector<1x24xf32> to vector<8x24xf32>
    %78 = arith.addf %76, %77 : vector<8x24xf32>
    %79 = vector.shape_cast %78 : vector<8x24xf32> to vector<1x8x24xf32>
    %cst_37 = arith.constant dense<0.000000e+00> : vector<1xf32>
    %80 = vector.multi_reduction <add>, %79, %cst_37 [1, 2] : vector<1x8x24xf32> to vector<1xf32>
    %81 = vector.shape_cast %80 : vector<1xf32> to vector<1x1x1xf32>
    %82 = vector.extract %81[0, 0, 0] : f32 from vector<1x1x1xf32>
    %83 = arith.mulf %78, %78 : vector<8x24xf32>
    %84 = vector.shape_cast %83 : vector<8x24xf32> to vector<1x8x24xf32>
    %cst_38 = arith.constant dense<0.000000e+00> : vector<1xf32>
    %85 = vector.multi_reduction <add>, %84, %cst_38 [1, 2] : vector<1x8x24xf32> to vector<1xf32>
    %86 = vector.shape_cast %85 : vector<1xf32> to vector<1x1x1xf32>
    %87 = vector.extract %86[0, 0, 0] : f32 from vector<1x1x1xf32>
    %cst_39 = arith.constant 0.00520833349 : f32
    %88 = arith.mulf %82, %cst_39 : f32
    %cst_40 = arith.constant 1.920000e+02 : f32
    %89 = arith.mulf %cst_40, %88 : f32
    %90 = arith.mulf %89, %88 : f32
    %91 = arith.subf %87, %90 : f32
    %cst_41 = arith.constant 0.000000e+00 : f32
    %92 = arith.maximumf %91, %cst_41 : f32
    %cst_42 = arith.constant 0.00523560215 : f32
    %93 = arith.mulf %92, %cst_42 : f32
    %94 = math.sqrt %93 : f32
    %95 = arith.mulf %94, %57 : f32
    %96 = vector.broadcast %95 : f32 to vector<8x24xf32>
    %97 = arith.mulf %96, %56 : vector<8x24xf32>
    %98 = vector.broadcast %88 : f32 to vector<8x24xf32>
    %99 = arith.addf %98, %97 : vector<8x24xf32>
    %100 = arith.addf %78, %99 : vector<8x24xf32>
    %cst_43 = arith.constant 0.000000e+00 : f32
    %101 = vector.broadcast %cst_43 : f32 to vector<8x24xf32>
    %102 = arith.maximumf %100, %101 : vector<8x24xf32>
    %c0_44 = arith.constant 0 : index
    %c0_45 = arith.constant 0 : index
    %103 = vector.load %arg7[%c0_44, %c0_45] : memref<24x128xf32, #tpu.memory_space<vmem>>, vector<24x128xf32>
    %cst_46 = arith.constant dense<0.000000e+00> : vector<8x128xf32>
    %104 = tpu.matmul %102, %103, %cst_46 {dimension_numbers = #tpu.dot_dimension_numbers<[1], [0], [0], [1], [0, 0, 1, 1], [], []>} : vector<8x24xf32>, vector<24x128xf32>, vector<8x128xf32> -> vector<8x128xf32>
    %c0_47 = arith.constant 0 : index
    %c0_48 = arith.constant 0 : index
    %105 = vector.load %arg8[%c0_47, %c0_48] : memref<1x128xf32, #tpu.memory_space<vmem>>, vector<1x128xf32>
    %106 = vector.broadcast %105 : vector<1x128xf32> to vector<8x128xf32>
    %107 = arith.addf %104, %106 : vector<8x128xf32>
    %c0_49 = arith.constant 0 : index
    %c0_50 = arith.constant 0 : index
    %108 = vector.load %arg13[%c0_49, %c0_50] : memref<8x128xf32, #tpu.memory_space<vmem>>, vector<8x128xf32>
    tpu.vector_store %arg13[%c0_49, %c0_50], %107 {strides = array<i32>} : memref<8x128xf32, #tpu.memory_space<vmem>>, vector<8x128xf32>,
    return
  }
}

</mosaic_0001>

<bundles_post_ra>
// kernel: tpu_custom_call.1
= control target key start
LH: loop header
LB: loop body
LE: loop exit
PB: predicated region body
PF: predicated region fallthrough
CT: control target
= control target key end

     0   :  { %vm1172_vm0 = vmmov 0   ;;  %s1706_s0 = inlined_call_operand.vmem [shape: f32[8,896], index: 0, kind: input, shape index: {}]   ;;  %s1707_s1 = inlined_call_operand.vmem [shape: f32[896,48], index: 1, kind: input, shape index: {}]   ;;  %s1708_s2 = inlined_call_operand.vmem [shape: f32[1,48], index: 2, kind: input, shape index: {}]   ;;  %s1709_s3 = inlined_call_operand.vmem [shape: f32[1,48], index: 3, kind: input, shape index: {}]   ;;  %s1710_s4 = inlined_call_operand.vmem [shape: f32[48,24], index: 4, kind: input, shape index: {}]   ;;  %s1711_s5 = inlined_call_operand.vmem [shape: f32[1,24], index: 5, kind: input, shape index: {}]   ;;  %s1712_s6 = inlined_call_operand.vmem [shape: f32[1,24], index: 6, kind: input, shape index: {}]   ;;  %s1713_s7 = inlined_call_operand.vmem [shape: f32[24,128], index: 7, kind: input, shape index: {}]   ;;  %s1714_s8 = inlined_call_operand.vmem [shape: f32[1,128], index: 8, kind: input, shape index: {}]   ;;  %s1715_s9 = inlined_call_operand.vmem [shape: f32[8,48], index: 9, kind: input, shape index: {}]   ;;  %s1716_s10 = inlined_call_operand.vmem [shape: f32[8,24], index: 10, kind: input, shape index: {}]   ;;  %s1717_s11 = inlined_call_operand.<no memory space> [shape: f32[1], index: 11, kind: input, shape index: {}]   ;;  %s1718_s12 = inlined_call_operand.<no memory space> [shape: f32[1], index: 12, kind: input, shape index: {}]   ;;  %s1719_s13 = inlined_call_operand.hbm [shape: f32[8,128], index: 13, kind: output, shape index: {}]  }
   0x1   :  { %v70_v0 = vld [vmem:[%s1707_s1 + $0x80] sm:$0xff]  ;;  %v71_v1 = vld [vmem:[%s1707_s1 + $0x88] sm:$0xff]  ;;  %v72_v11 = vld [vmem:[%s1707_s1 + $0x90] sm:$0xff] }
   0x2   :  { %v102_v2 = vld [vmem:[%s1707_s1 + $0x180] sm:$0xff]  ;;  %v990_v3 = vpack.c.bf16 %v71_v1, %v70_v0  ;;  %v103_v4 = vld [vmem:[%s1707_s1 + $0x188] sm:$0xff]  ;;  %v73_v13 = vld [vmem:[%s1707_s1 + $0x98] sm:$0xff] }
   0x3   :  { %v54_v5 = vld [vmem:[%s1707_s1] sm:$0xff]  ;;  %v55_v6 = vld [vmem:[%s1707_s1 + $0x8] sm:$0xff]  ;;  %v1022_v7 = vpack.c.bf16 %v103_v4, %v102_v2  ;;  %v104_v14 = vld [vmem:[%s1707_s1 + $0x190] sm:$0xff]  ;;  %v994_v16 = vpack.c.bf16 %v73_v13, %v72_v11 }
   0x4   :  { %v992_v8 = vpack.c.bf16 %v55_v6, %v54_v5  ;;  %v86_v9 = vld [vmem:[%s1707_s1 + $0x100] sm:$0xff]  ;;  %v87_v10 = vld [vmem:[%s1707_s1 + $0x108] sm:$0xff]  ;;  %991 = vmatprep.subr.bf16.mxu0 %v990_v3  ;;  %v105_v15 = vld [vmem:[%s1707_s1 + $0x198] sm:$0xff] }
   0x5   :  { %v1024_v12 = vpack.c.bf16 %v87_v10, %v86_v9  ;;  %1023 = vmatprep.subr.bf16.mxu1 %v1022_v7  ;;  %v1026_v17 = vpack.c.bf16 %v105_v15, %v104_v14  ;;  %v56_v18 = vld [vmem:[%s1707_s1 + $0x10] sm:$0xff]  ;;  %v57_v19 = vld [vmem:[%s1707_s1 + $0x18] sm:$0xff]  ;;  %v74_v23 = vld [vmem:[%s1707_s1 + $0xa0] sm:$0xff] }
   0x6   :  { %993 = vmatpush3.bf16.msra.mxu0 %v992_v8  ;;  %v88_v20 = vld [vmem:[%s1707_s1 + $0x110] sm:$0xff]  ;;  %v996_v21 = vpack.c.bf16 %v57_v19, %v56_v18  ;;  %v89_v22 = vld [vmem:[%s1707_s1 + $0x118] sm:$0xff]  ;;  %v75_v24 = vld [vmem:[%s1707_s1 + $0xa8] sm:$0xff] }
   0x7   :  { %1025 = vmatpush3.bf16.msra.mxu1 %v1024_v12  ;;  %995 = vmatprep.subr.bf16.mxu0 %v994_v16  ;;  %v1028_v25 = vpack.c.bf16 %v89_v22, %v88_v20  ;;  %v998_v26 = vpack.c.bf16 %v75_v24, %v74_v23  ;;  %v106_v27 = vld [vmem:[%s1707_s1 + $0x1a0] sm:$0xff]  ;;  %v107_v28 = vld [vmem:[%s1707_s1 + $0x1a8] sm:$0xff]  ;;  %v76_v35 = vld [vmem:[%s1707_s1 + $0xb0] sm:$0xff] }
   0x8   :  { %1027 = vmatprep.subr.bf16.mxu1 %v1026_v17  ;;  %v58_v29 = vld [vmem:[%s1707_s1 + $0x20] sm:$0xff]  ;;  %v1030_v30 = vpack.c.bf16 %v107_v28, %v106_v27  ;;  %v59_v31 = vld [vmem:[%s1707_s1 + $0x28] sm:$0xff]  ;;  %v77_v36 = vld [vmem:[%s1707_s1 + $0xb8] sm:$0xff] }
   0x9   :  { %v90_v32 = vld [vmem:[%s1707_s1 + $0x120] sm:$0xff]  ;;  %v91_v33 = vld [vmem:[%s1707_s1 + $0x128] sm:$0xff]  ;;  %v1000_v34 = vpack.c.bf16 %v59_v31, %v58_v29  ;;  %v108_v37 = vld [vmem:[%s1707_s1 + $0x1b0] sm:$0xff]  ;;  %v1002_v39 = vpack.c.bf16 %v77_v36, %v76_v35 }
   0xa   :  { %997 = vmatpush3.bf16.msra.mxu0 %v996_v21  ;;  %v1032_v38 = vpack.c.bf16 %v91_v33, %v90_v32  ;;  %v109_v40 = vld [vmem:[%s1707_s1 + $0x1b8] sm:$0xff]  ;;  %v60_v41 = vld [vmem:[%s1707_s1 + $0x30] sm:$0xff]  ;;  %v78_v46 = vld [vmem:[%s1707_s1 + $0xc0] sm:$0xff] }
   0xb   :  { %1029 = vmatpush3.bf16.msra.mxu1 %v1028_v25  ;;  %999 = vmatprep.subr.bf16.mxu0 %v998_v26  ;;  %v61_v42 = vld [vmem:[%s1707_s1 + $0x38] sm:$0xff]  ;;  %v1034_v43 = vpack.c.bf16 %v109_v40, %v108_v37  ;;  %v92_v44 = vld [vmem:[%s1707_s1 + $0x130] sm:$0xff]  ;;  %v79_v47 = vld [vmem:[%s1707_s1 + $0xc8] sm:$0xff] }
   0xc   :  { %1031 = vmatprep.subr.bf16.mxu1 %v1030_v30  ;;  %v93_v45 = vld [vmem:[%s1707_s1 + $0x138] sm:$0xff]  ;;  %v110_v48 = vld [vmem:[%s1707_s1 + $0x1c0] sm:$0xff]  ;;  %v111_v49 = vld [vmem:[%s1707_s1 + $0x1c8] sm:$0xff]  ;;  %v1004_v50 = vpack.c.bf16 %v61_v42, %v60_v41  ;;  %v1006_v52 = vpack.c.bf16 %v79_v47, %v78_v46 }
   0xd   :  { %v1036_v51 = vpack.c.bf16 %v93_v45, %v92_v44  ;;  %v62_v53 = vld [vmem:[%s1707_s1 + $0x40] sm:$0xff]  ;;  %v63_v54 = vld [vmem:[%s1707_s1 + $0x48] sm:$0xff]  ;;  %v1038_v56 = vpack.c.bf16 %v111_v49, %v110_v48  ;;  %v80_v58 = vld [vmem:[%s1707_s1 + $0xd0] sm:$0xff] }
   0xe   :  { %1001 = vmatpush3.bf16.msra.mxu0 %v1000_v34  ;;  %v94_v55 = vld [vmem:[%s1707_s1 + $0x140] sm:$0xff]  ;;  %v95_v57 = vld [vmem:[%s1707_s1 + $0x148] sm:$0xff]  ;;  %v81_v59 = vld [vmem:[%s1707_s1 + $0xd8] sm:$0xff]  ;;  %v1008_v62 = vpack.c.bf16 %v63_v54, %v62_v53 }
   0xf   :  { %1033 = vmatpush3.bf16.msra.mxu1 %v1032_v38  ;;  %1003 = vmatprep.subr.bf16.mxu0 %v1002_v39  ;;  %v112_v60 = vld [vmem:[%s1707_s1 + $0x1d0] sm:$0xff]  ;;  %v113_v61 = vld [vmem:[%s1707_s1 + $0x1d8] sm:$0xff]  ;;  %v1040_v63 = vpack.c.bf16 %v95_v57, %v94_v55  ;;  %v1010_v0 = vpack.c.bf16 %v81_v59, %v80_v58  ;;  %v82_v6 = vld [vmem:[%s1707_s1 + $0xe0] sm:$0xff] }
  0x10   :  { %1035 = vmatprep.subr.bf16.mxu1 %v1034_v43  ;;  %v64_v1 = vld [vmem:[%s1707_s1 + $0x50] sm:$0xff]  ;;  %v65_v2 = vld [vmem:[%s1707_s1 + $0x58] sm:$0xff]  ;;  %v1042_v4 = vpack.c.bf16 %v113_v61, %v112_v60  ;;  %v83_v7 = vld [vmem:[%s1707_s1 + $0xe8] sm:$0xff] }
  0x11   :  { %v96_v3 = vld [vmem:[%s1707_s1 + $0x150] sm:$0xff]  ;;  %v97_v5 = vld [vmem:[%s1707_s1 + $0x158] sm:$0xff]  ;;  %v114_v8 = vld [vmem:[%s1707_s1 + $0x1e0] sm:$0xff]  ;;  %v1012_v10 = vpack.c.bf16 %v65_v2, %v64_v1  ;;  %v1014_v14 = vpack.c.bf16 %v83_v7, %v82_v6  ;;  %v1173_v1 = vmov 0.0  }
  0x12   :  { %1005 = vmatpush3.bf16.msra.mxu0 %v1004_v50  ;;  %v115_v9 = vld [vmem:[%s1707_s1 + $0x1e8] sm:$0xff]  ;;  %v66_v11 = vld [vmem:[%s1707_s1 + $0x60] sm:$0xff]  ;;  %v1044_v13 = vpack.c.bf16 %v97_v5, %v96_v3  ;;  %v50_v17 = vld [vmem:[%s1706_s0 + $0x18] sm:$0xff] }
  0x13   :  { %1037 = vmatpush3.bf16.msra.mxu1 %v1036_v51  ;;  %1007 = vmatprep.subr.bf16.mxu0 %v1006_v52  ;;  %v67_v12 = vld [vmem:[%s1707_s1 + $0x68] sm:$0xff]  ;;  %v98_v15 = vld [vmem:[%s1707_s1 + $0x160] sm:$0xff]  ;;  %v1046_v18 = vpack.c.bf16 %v115_v9, %v114_v8  ;;  %v84_v20 = vld [vmem:[%s1707_s1 + $0xf0] sm:$0xff]  ;;  %v1171_v51 = vmov 0.0|0.0  }
  0x14   :  { %1039 = vmatprep.subr.bf16.mxu1 %v1038_v56  ;;  %v48_v16 = vld [vmem:[%s1706_s0 + $0x8] sm:$0xff]  ;;  %v85_v21 = vld [vmem:[%s1707_s1 + $0xf8] sm:$0xff]  ;;  %v116_v22 = vld [vmem:[%s1707_s1 + $0x1f0] sm:$0xff]  ;;  %300 = vmatprep.mubr.f32.mxu1 %v50_v17  ;;  %v1016_v24 = vpack.c.bf16 %v67_v12, %v66_v11 }
  0x15   :  { %v99_v19 = vld [vmem:[%s1707_s1 + $0x168] sm:$0xff]  ;;  %230 = vmatprep.mubr.f32.mxu0 %v48_v16  ;;  %v117_v23 = vld [vmem:[%s1707_s1 + $0x1f8] sm:$0xff]  ;;  %v1018_v26 = vpack.c.bf16 %v85_v21, %v84_v20  ;;  %v68_v27 = vld [vmem:[%s1707_s1 + $0x70] sm:$0xff] }
  0x16   :  { %1009 = vmatpush3.bf16.msra.mxu0 %v1008_v62  ;;  %v1048_v25 = vpack.c.bf16 %v99_v19, %v98_v15  ;;  %v69_v28 = vld [vmem:[%s1707_s1 + $0x78] sm:$0xff]  ;;  %v100_v29 = vld [vmem:[%s1707_s1 + $0x170] sm:$0xff]  ;;  %v1050_v30 = vpack.c.bf16 %v117_v23, %v116_v22  ;;  %v134_v32 = vld [vmem:[%s1707_s1 + $0x280] sm:$0xff] }
  0x17   :  { %1041 = vmatpush3.bf16.msra.mxu1 %v1040_v63  ;;  %1011 = vmatprep.subr.bf16.mxu0 %v1010_v0  ;;  %v101_v31 = vld [vmem:[%s1707_s1 + $0x178] sm:$0xff]  ;;  %v135_v33 = vld [vmem:[%s1707_s1 + $0x288] sm:$0xff]  ;;  %v1020_v34 = vpack.c.bf16 %v69_v28, %v68_v27  ;;  %v118_v37 = vld [vmem:[%s1707_s1 + $0x200] sm:$0xff] }
  0x18   :  { %1043 = vmatprep.subr.bf16.mxu1 %v1042_v4  ;;  %v1052_v35 = vpack.c.bf16 %v101_v31, %v100_v29  ;;  %v1054_v36 = vpack.c.bf16 %v135_v33, %v134_v32  ;;  %v119_v38 = vld [vmem:[%s1707_s1 + $0x208] sm:$0xff]  ;;  %v136_v39 = vld [vmem:[%s1707_s1 + $0x290] sm:$0xff]  ;;  %v137_v40 = vld [vmem:[%s1707_s1 + $0x298] sm:$0xff] }
  0x19   :  { %v150_v41 = vld [vmem:[%s1707_s1 + $0x300] sm:$0xff]  ;;  %v151_v42 = vld [vmem:[%s1707_s1 + $0x308] sm:$0xff]  ;;  %v49_v44 = vld [vmem:[%s1706_s0 + $0x10] sm:$0xff]  ;;  %v1056_v45 = vpack.c.bf16 %v119_v38, %v118_v37  ;;  %v1058_v46 = vpack.c.bf16 %v137_v40, %v136_v39 }
  0x1a   :  { %1013 = vmatpush3.bf16.msra.mxu0 %v1012_v10  ;;  %v47_v43 = vld [vmem:[%s1706_s0] sm:$0xff]  ;;  %v120_v47 = vld [vmem:[%s1707_s1 + $0x210] sm:$0xff]  ;;  %v121_v48 = vld [vmem:[%s1707_s1 + $0x218] sm:$0xff]  ;;  %v1087_v49 = vpack.c.bf16 %v151_v42, %v150_v41 }
  0x1b   :  { %1045 = vmatpush3.bf16.msra.mxu1 %v1044_v13  ;;  %1015 = vmatprep.subr.bf16.mxu0 %v1014_v14  ;;  %v138_v50 = vld [vmem:[%s1707_s1 + $0x2a0] sm:$0xff]  ;;  %v139_v52 = vld [vmem:[%s1707_s1 + $0x2a8] sm:$0xff]  ;;  %v152_v53 = vld [vmem:[%s1707_s1 + $0x310] sm:$0xff]  ;;  %v1060_v55 = vpack.c.bf16 %v121_v48, %v120_v47 }
  0x1c   :  { %1047 = vmatprep.subr.bf16.mxu1 %v1046_v18  ;;  %v153_v54 = vld [vmem:[%s1707_s1 + $0x318] sm:$0xff]  ;;  %v122_v56 = vld [vmem:[%s1707_s1 + $0x220] sm:$0xff]  ;;  %v1062_v57 = vpack.c.bf16 %v139_v52, %v138_v50  ;;  %v123_v58 = vld [vmem:[%s1707_s1 + $0x228] sm:$0xff] }
  0x1d   :  { %v1090_v59 = vpack.c.bf16 %v153_v54, %v152_v53  ;;  %v140_v60 = vld [vmem:[%s1707_s1 + $0x2b0] sm:$0xff]  ;;  %v141_v61 = vld [vmem:[%s1707_s1 + $0x2b8] sm:$0xff]  ;;  %v154_v62 = vld [vmem:[%s1707_s1 + $0x320] sm:$0xff] }
  0x1e   :  { %1017 = vmatpush3.bf16.msra.mxu0 %v1016_v24  ;;  %v155_v63 = vld [vmem:[%s1707_s1 + $0x328] sm:$0xff] }
  0x1f   :  { %1049 = vmatpush3.bf16.msra.mxu1 %v1048_v25  ;;  %1019 = vmatprep.subr.bf16.mxu0 %v1018_v26  ;;  %v52_v0 = vld [vmem:[%s1706_s0 + $0x28] sm:$0xff] }
  0x20   :  { %1051 = vmatprep.subr.bf16.mxu1 %v1050_v30 }
  0x22   :  { %1021 = vmatpush3.bf16.msra.mxu0 %v1020_v34 }
  0x23   :  { %1053 = vmatpush3.bf16.msra.mxu1 %v1052_v35  ;;  %1055 = vmatprep.subr.bf16.mxu0 %v1054_v36 }
  0x24   :  { %1086 = vmatprep.subr.bf16.mxu1 %v1171_v51 }
  0x25   :  { %231 = vmatmul.mubr.f32.vlgmr.msra.gmra.mrb[0].mxu0 %v47_v43 }
  0x26   :  { %301 = vmatmul.mubr.f32.vlgmr.msra.gmra.mrb[0].mxu1 %v49_v44  ;;  %1057 = vmatpush3.bf16.msra.mxu0 %v1056_v45 }
  0x27   :  { %1059 = vmatprep.subr.bf16.mxu0 %v1058_v46  ;;  %1088 = vmatpush3.bf16.msra.mxu1 %v1087_v49 }
  0x28   :  { %1089 = vmatprep.subr.bf16.mxu1 %v1171_v51  ;;  %963 = vmatprep.mubr.msk.f32.mxu1 %vm1172_vm0, %v1173_v1 }
  0x29   :  { %370 = vmatprep.mubr.f32.mxu0 %v52_v0 }
  0x2a   :  { %20 = vsyncpa [#allocation5], 0  ;;  %1061 = vmatpush3.bf16.msra.mxu0 %v1060_v55  ;;  %v1064_v2 = vpack.c.bf16 %v123_v58, %v122_v56  ;;  %v1066_v3 = vpack.c.bf16 %v141_v61, %v140_v60  ;;  %v124_v4 = vld [vmem:[%s1707_s1 + $0x230] sm:$0xff]  ;;  %v125_v5 = vld [vmem:[%s1707_s1 + $0x238] sm:$0xff]  ;;  %v1093_v6 = vpack.c.bf16 %v155_v63, %v154_v62  ;;  %vm450_vm1 = vcmask 392192  }
  0x2b   :  { %1063 = vmatprep.subr.bf16.mxu0 %v1062_v57  ;;  %1091 = vmatpush3.bf16.msra.mxu1 %v1090_v59  ;;  %v142_v7 = vld [vmem:[%s1707_s1 + $0x2c0] sm:$0xff]  ;;  %v143_v8 = vld [vmem:[%s1707_s1 + $0x2c8] sm:$0xff]  ;;  %v156_v9 = vld [vmem:[%s1707_s1 + $0x330] sm:$0xff]  ;;  %v1068_v11 = vpack.c.bf16 %v125_v5, %v124_v4  ;;  %vm615_vm4 = vcmask 195584  }
  0x2c   :  { %1092 = vmatprep.subr.bf16.mxu1 %v1171_v51  ;;  %v157_v10 = vld [vmem:[%s1707_s1 + $0x338] sm:$0xff]  ;;  %v1070_v12 = vpack.c.bf16 %v143_v8, %v142_v7  ;;  %v126_v13 = vld [vmem:[%s1707_s1 + $0x240] sm:$0xff]  ;;  %v127_v14 = vld [vmem:[%s1707_s1 + $0x248] sm:$0xff] }
  0x2d   :  { %v1096_v15 = vpack.c.bf16 %v157_v10, %v156_v9  ;;  %v144_v16 = vld [vmem:[%s1707_s1 + $0x2d0] sm:$0xff]  ;;  %v145_v17 = vld [vmem:[%s1707_s1 + $0x2d8] sm:$0xff]  ;;  %v158_v18 = vld [vmem:[%s1707_s1 + $0x340] sm:$0xff]  ;;  %v1072_v20 = vpack.c.bf16 %v127_v14, %v126_v13 }
  0x2e   :  { %1065 = vmatpush3.bf16.msra.mxu0 %v1064_v2  ;;  %v159_v19 = vld [vmem:[%s1707_s1 + $0x348] sm:$0xff]  ;;  %v1074_v21 = vpack.c.bf16 %v145_v17, %v144_v16  ;;  %v128_v22 = vld [vmem:[%s1707_s1 + $0x250] sm:$0xff]  ;;  %v129_v23 = vld [vmem:[%s1707_s1 + $0x258] sm:$0xff] }
  0x2f   :  { %1067 = vmatprep.subr.bf16.mxu0 %v1066_v3  ;;  %1094 = vmatpush3.bf16.msra.mxu1 %v1093_v6  ;;  %v1099_v24 = vpack.c.bf16 %v159_v19, %v158_v18  ;;  %v146_v25 = vld [vmem:[%s1707_s1 + $0x2e0] sm:$0xff]  ;;  %v147_v26 = vld [vmem:[%s1707_s1 + $0x2e8] sm:$0xff]  ;;  %v160_v27 = vld [vmem:[%s1707_s1 + $0x350] sm:$0xff]  ;;  %v1076_v29 = vpack.c.bf16 %v129_v23, %v128_v22 }
  0x30   :  { %1095 = vmatprep.subr.bf16.mxu1 %v1171_v51  ;;  %v161_v28 = vld [vmem:[%s1707_s1 + $0x358] sm:$0xff]  ;;  %v1078_v30 = vpack.c.bf16 %v147_v26, %v146_v25  ;;  %v130_v31 = vld [vmem:[%s1707_s1 + $0x260] sm:$0xff]  ;;  %v131_v32 = vld [vmem:[%s1707_s1 + $0x268] sm:$0xff] }
  0x31   :  { %v1102_v33 = vpack.c.bf16 %v161_v28, %v160_v27  ;;  %v148_v34 = vld [vmem:[%s1707_s1 + $0x2f0] sm:$0xff]  ;;  %v149_v35 = vld [vmem:[%s1707_s1 + $0x2f8] sm:$0xff]  ;;  %v162_v36 = vld [vmem:[%s1707_s1 + $0x360] sm:$0xff]  ;;  %v1080_v38 = vpack.c.bf16 %v131_v32, %v130_v31 }
  0x32   :  { %1069 = vmatpush3.bf16.msra.mxu0 %v1068_v11  ;;  %v163_v37 = vld [vmem:[%s1707_s1 + $0x368] sm:$0xff]  ;;  %v1082_v39 = vpack.c.bf16 %v149_v35, %v148_v34  ;;  %v132_v40 = vld [vmem:[%s1707_s1 + $0x270] sm:$0xff]  ;;  %v133_v41 = vld [vmem:[%s1707_s1 + $0x278] sm:$0xff] }
  0x33   :  { %1071 = vmatprep.subr.bf16.mxu0 %v1070_v12  ;;  %1097 = vmatpush3.bf16.msra.mxu1 %v1096_v15  ;;  %v1105_v42 = vpack.c.bf16 %v163_v37, %v162_v36  ;;  %v164_v43 = vld [vmem:[%s1707_s1 + $0x370] sm:$0xff]  ;;  %v165_v44 = vld [vmem:[%s1707_s1 + $0x378] sm:$0xff]  ;;  %v1084_v45 = vpack.c.bf16 %v133_v41, %v132_v40  ;;  %v51_v47 = vld [vmem:[%s1706_s0 + $0x20] sm:$0xff]  ;;  %s1174_s1 = smov 0.0  }
  0x34   :  { %1098 = vmatprep.subr.bf16.mxu1 %v1171_v51  ;;  %v1108_v46 = vpack.c.bf16 %v165_v44, %v164_v43  ;;  %v53_v48 = vld [vmem:[%s1706_s0 + $0x30] sm:$0xff]  ;;  %v446_v23 = vld [vmem:[%s1708_s2] sm:$0x1] }
  0x35   :  { %v447_v27 = vld [vmem:[%s1709_s3] sm:$0x1] }
  0x36   :  { %1073 = vmatpush3.bf16.msra.mxu0 %v1072_v20 }
  0x37   :  { %1075 = vmatprep.subr.bf16.mxu0 %v1074_v21  ;;  %1100 = vmatpush3.bf16.msra.mxu1 %v1099_v24  ;;  %v476_v21 = vlaneseq }
  0x38   :  { %1101 = vmatprep.subr.bf16.mxu1 %v1171_v51 }
  0x39   :  { %v477_v22 = vshrl.u32 %v476_v21, 7 }
  0x3a   :  { %1077 = vmatpush3.bf16.msra.mxu0 %v1076_v29 }
  0x3b   :  { %1079 = vmatprep.subr.bf16.mxu0 %v1078_v30  ;;  %1103 = vmatpush3.bf16.msra.mxu1 %v1102_v33  ;;  %v1624_v24 = vsub.s32 0, %v477_v22 }
  0x3c   :  { %1104 = vmatprep.subr.bf16.mxu1 %v1171_v51 }
  0x3e   :  { %1081 = vmatpush3.bf16.msra.mxu0 %v1080_v38 }
  0x3f   :  { %1083 = vmatprep.subr.bf16.mxu0 %v1082_v39  ;;  %1106 = vmatpush3.bf16.msra.mxu1 %v1105_v42 }
  0x40   :  { %1107 = vmatprep.subr.bf16.mxu1 %v1171_v51 }
  0x42   :  { %1085 = vmatpush3.bf16.msra.mxu0 %v1084_v45 }
  0x43   :  { %1109 = vmatpush3.bf16.msra.mxu1 %v1108_v46  ;;  %1110 = vmatprep.subr.bf16.mxu0 %v1171_v51 }
  0x44   :  { %1119 = vmatprep.subr.bf16.mxu1 %v1171_v51 }
  0x45   :  { %371 = vmatmul.mubr.f32.vlgmr.msra.gmra.mrb[2].mxu0 %v51_v47  ;;  %v532_v47 = vld [vmem:[%s1710_s4] sm:$0xff] }
  0x46   :  { %964 = vmatmul.mubr.f32.vlgmr.msra.gmra.mrb[2].mxu1 %v53_v48  ;;  %978 = vmatprep.mubr.msk.f32.mxu0 %vm1172_vm0, %v1173_v1  ;;  %v533_v48 = vld [vmem:[%s1710_s4 + $0x8] sm:$0xff] }
  0x47   :  { %987 = vmatprep.mubr.msk.f32.mxu1 %vm1172_vm0, %v1173_v1 }
  0xf8   :  { %v830_v49 = vpop.f32.mrb[0].mxu0 }
  0xf9   :  { %v865_v50 = vpop.f32.mrb[0].mxu1  ;;  %v831_v52 = vpop.f32.mrb[1].mxu0 }
  0xfa   :  { %v832_v53 = vadd.f32 %v831_v52, %v830_v49  ;;  %v866_v54 = vpop.f32.mrb[1].mxu1  ;;  %v1111_v52 = vpack.c.bf16 %v533_v48, %v532_v47 }
  0xfb   :  { %v867_v55 = vadd.f32 %v866_v54, %v865_v50  ;;  %v534_v54 = vld [vmem:[%s1710_s4 + $0x10] sm:$0xff] }
  0xfc   :  { %1112 = vmatpush3.bf16.msra.mxu0 %v1111_v52 }
  0xfd   :  { %v303_v56 = vadd.f32 %v867_v55, %v832_v53  ;;  %1113 = vmatprep.subr.bf16.mxu0 %v1171_v51  ;;  %v535_v55 = vld [vmem:[%s1710_s4 + $0x18] sm:$0xff] }
 0x118   :  { %v900_v57 = vpop.f32.mrb[2].mxu0 }
 0x119   :  { %v901_v58 = vpop.f32.mrb[3].mxu0  ;;  %v442_v59 = vpop.f32.mrb[2].mxu1 }
 0x11a   :  { %v902_v60 = vadd.f32 %v901_v58, %v900_v57  ;;  %v965_v61 = vpop.f32.mrb[3].mxu1  ;;  %v1114_v57 = vpack.c.bf16 %v535_v55, %v534_v54  ;;  %v536_v58 = vld [vmem:[%s1710_s4 + $0x20] sm:$0xff] }
 0x11c   :  { %v373_v62 = vadd.f32 %v902_v60, %v303_v56  ;;  %1115 = vmatpush3.bf16.msra.mxu0 %v1114_v57 }
 0x11d   :  { %1116 = vmatprep.subr.bf16.mxu0 %v1171_v51 }
 0x11e   :  { %v443_v63 = vadd.f32 %v442_v59, %v373_v62  ;;  %v537_v59 = vld [vmem:[%s1710_s4 + $0x28] sm:$0xff] }
 0x11f   :  { %v1117_v60 = vpack.c.bf16 %v537_v59, %v536_v58 }
 0x120   :  { %v451_v0 = vsel %vm450_vm1, %v443_v63, 0.0  ;;  %v458_v2 = vmul.f32 %v443_v63, %v443_v63 }
 0x121   :  { %v452_v3 = vrot.slane %v451_v0, 4  ;;  %1118 = vmatpush3.bf16.msra.mxu0 %v1117_v60  ;;  %v697_v60 = vld [vmem:[%s1713_s7] sm:$0xff] }
 0x122   :  { %v459_v4 = vsel %vm450_vm1, %v458_v2, 0.0 }
 0x123   :  { %v453_v5 = vadd.f32 %v452_v3, %v451_v0  ;;  %v460_v6 = vrot.slane %v459_v4, 4  ;;  %v448_v3 = vld [vmem:[%s1715_s9] sm:$0xff] }
 0x125   :  { %v454_v7 = vrot.slane %v453_v5, 2  ;;  %v461_v8 = vadd.f32 %v460_v6, %v459_v4 }
 0x127   :  { %v455_v9 = vadd.f32 %v454_v7, %v453_v5  ;;  %v462_v10 = vrot.slane %v461_v8, 2 }
 0x129   :  { %v456_v11 = vrot.slane %v455_v9, 1  ;;  %v463_v12 = vadd.f32 %v462_v10, %v461_v8 }
 0x12b   :  { %v457_v13 = vadd.f32 %v456_v11, %v455_v9  ;;  %v464_v14 = vrot.slane %v463_v12, 1 }
 0x12d   :  { %v465_v15 = vadd.f32 %v464_v14, %v463_v12  ;;  %v466_v16 = vmul.f32 0.125, %v457_v13 }
 0x12f   :  { %v467_v17 = vmul.f32 0.125, %v465_v15  ;;  %v468_v18 = vmul.f32 %v466_v16, %v466_v16 }
 0x131   :  { %v469_v19 = vsub.f32 %v467_v17, %v468_v18 }
 0x133   :  { %v470_v20 = vadd.f32 1e-05, %v469_v19 }
 0x135   :  { %1139 = vrsqrt.f32 %v470_v20 }
 0x13f   :  { %v1140_v25 = vpop.eup %1139 }
 0x140   :  { %v472_v26 = vmul.f32 %v1140_v25, %v446_v23 }
 0x142   :  { %v479_v28 = vrot.slane %v472_v26, %v1624_v24  ;;  %v473_v29 = vmul.f32 %v472_v26, %v466_v16 }
 0x144   :  { %v474_v30 = vsub.f32 %v447_v27, %v473_v29  ;;  %v481_v31 = vmul.f32 %v479_v28, %v443_v63 }
 0x146   :  { %v486_v32 = vrot.slane %v474_v30, %v1624_v24 }
 0x148   :  { %v488_v33 = vadd.f32 %v486_v32, %v481_v31 }
 0x14a   :  { %v489_v34 = vsel %vm450_vm1, %v488_v33, 0.0  ;;  %v499_v35 = vmul.f32 %v488_v33, %v488_v33 }
 0x14b   :  { %490 = vadd.xlane.f32.xlu0 %v489_v34 }
 0x14c   :  { %v500_v36 = vsel %vm450_vm1, %v499_v35, 0.0 }
 0x14f   :  { %501 = vadd.xlane.f32.xlu0 %v500_v36  ;;  %v612_v36 = vld [vmem:[%s1712_s6] sm:$0x1] }
 0x1d8   :  { %v491_v37 = vpop.xlane.xlu0 %490 }
 0x1d9   :  { %v492_v38 = vrot.slane %v491_v37, 4 }
 0x1db   :  { %v493_v39 = vadd.f32 %v492_v38, %v491_v37 }
 0x1dc   :  { %v502_v40 = vpop.xlane.xlu0 %501 }
 0x1dd   :  { %v494_v41 = vrot.slane %v493_v39, 2  ;;  %v503_v42 = vrot.slane %v502_v40, 4 }
 0x1df   :  { %v504_v43 = vadd.f32 %v503_v42, %v502_v40  ;;  %v495_v44 = vadd.f32 %v494_v41, %v493_v39 }
 0x1e1   :  { %v505_v45 = vrot.slane %v504_v43, 2  ;;  %v496_v46 = vrot.slane %v495_v44, 1 }
 0x1e3   :  { %v506_v49 = vadd.f32 %v505_v45, %v504_v43  ;;  %v497_v50 = vadd.f32 %v496_v46, %v495_v44 }
 0x1e5   :  { %1122 = vpush %v497_v50  ;;  %v507_v53 = vrot.slane %v506_v49, 1 }
 0x1e7   :  { %v508_v56 = vadd.f32 %v507_v53, %v506_v49 }
 0x1e9   :  { %1124 = vpush %v508_v56 }
 0x216   :  { %s1123_s20 = spop %1122 }
 0x217   :  { %s510_s21 = smul.f32 0.0026041667, %s1123_s20 }
 0x219   :  { %s511_s22 = smul.f32 384.0, %s510_s21  ;;  %v528_v6 = vstv %s510_s21 }
 0x21a   :  { %s1125_s24 = spop %1124 }
 0x21b   :  { %s512_s23 = smul.f32 %s511_s22, %s510_s21 }
 0x21d   :  { %s513_s0 = ssub.f32 %s1125_s24, %s512_s23 }
 0x21f   :  { %s514_s25 = smax.f32 %s1174_s1, %s513_s0 }
 0x220   :  { %s515_s26 = smul.f32 0.002610966, %s514_s25 }
 0x222   :  { %v516_v51 = vstv %s515_s26 }
 0x223   :  { %1141 = vrsqrt.f32 %v516_v51  ;;  %vm519_vm2 = vcmp.eq.f32.partialorder %v516_v51, inf  ;;  %v522_v63 = vand.u32 2147483648, %v516_v51  ;;  %vm521_vm3 = vcmp.eq.f32.partialorder %v516_v51, 0.0 }
 0x22d   :  { %v1142_v61 = vpop.eup %1141 }
 0x22e   :  { %v518_v62 = vmul.f32 %v1142_v61, %v516_v51 }
 0x230   :  { %v520_v0 = vsel %vm519_vm2, %v516_v51, %v518_v62  ;;  %v698_v51 = vld [vmem:[%s1713_s7 + $0x8] sm:$0xff]  ;;  %v699_v62 = vld [vmem:[%s1713_s7 + $0x10] sm:$0xff] }
 0x231   :  { %v523_v2 = vsel %vm521_vm3, %v522_v63, %v520_v0  ;;  %v1120_v61 = vpack.c.bf16 %v698_v51, %v697_v60 }
 0x232   :  { %1126 = vpush %v523_v2 }
 0x233   :  { %1121 = vmatpush3.bf16.msra.mxu1 %v1120_v61 }
 0x234   :  { %985 = vmatprep.subr.mxu1 %v1173_v1 }
 0x237   :  { %986 = vmatpush3.msra.mxu1 %v699_v62 }
 0x263   :  { %s1127_s4 = spop %1126 }
 0x264   :  { %s525_s29 = smul.f32 %s1127_s4, %s1717_s11 }
 0x266   :  { %v526_v4 = vstv %s525_s29  ;;  %s1175_s29 = smov [#allocation4]  }
 0x267   :  { %v527_v5 = vmul.f32 %v526_v4, %v448_v3  ;;  %s787_s9 = sshll.u32 %s1175_s29, 4  ;;  %s788_s9 = int_to_ptr.vmem [resolvable:$true] %s787_s9 }
 0x268   :  { %p1152_p1 = scmp.lt.s32.totalorder %s788_s9, %s788_s9 }
 0x269   :  { %v529_v7 = vadd.f32 %v528_v6, %v527_v5  ;;  %v613_v5 = vld [vmem:[%s1716_s10] sm:$0xff]  ;;  %s1147_s10 = scalar_lea.vmem %s788_s9, 128 }
 0x26a   :  { %p1148_p0 = scmp.ne.s32.totalorder %s788_s9, %s1147_s10  ;;  %p1153_p2 = scmp.lt.s32.totalorder %s1147_s10, %s1147_s10 }
 0x26b   :  { %v530_v8 = vadd.f32 %v529_v7, %v488_v33  ;;  %v611_v33 = vld [vmem:[%s1711_s5] sm:$0x1] }
 0x26c   :  { %p1154_p3 = por %p1153_p2, %p1152_p1 }
 0x26d   :  { %v531_v9 = vmax.f32 %v530_v8, 0.0 }
 0x26e   :  { %p1155_p4 = pnand %p1154_p3, %p1148_p0 }
 0x26f   :  { %979 = vmatmul.mubr.msk.f32.vlgmr.msra.gmra.mrb[4].mxu0 %vm450_vm1, %v531_v9 }
 0x342   :  { %v607_v10 = vpop.f32.mrb[4].mxu0 }
 0x343   :  { %v616_v11 = vsel %vm615_vm4, %v607_v10, 0.0  ;;  %v623_v12 = vmul.f32 %v607_v10, %v607_v10  ;;  %v980_v13 = vpop.f32.mrb[5].mxu0 }
 0x344   :  { %v617_v14 = vrot.slane %v616_v11, 4 }
 0x345   :  { %v624_v15 = vsel %vm615_vm4, %v623_v12, 0.0  ;;  %v796_v12 = vld [vmem:[%s1714_s8] ss:$0 sm:$0xff] }
 0x346   :  { %v618_v16 = vadd.f32 %v617_v14, %v616_v11  ;;  %v625_v17 = vrot.slane %v624_v15, 4 }
 0x348   :  { %v619_v18 = vrot.slane %v618_v16, 2  ;;  %v626_v19 = vadd.f32 %v625_v17, %v624_v15 }
 0x34a   :  { %v620_v20 = vadd.f32 %v619_v18, %v618_v16  ;;  %v627_v21 = vrot.slane %v626_v19, 2 }
 0x34c   :  { %v621_v22 = vrot.slane %v620_v20, 1  ;;  %v628_v23 = vadd.f32 %v627_v21, %v626_v19 }
 0x34e   :  { %v622_v25 = vadd.f32 %v621_v22, %v620_v20  ;;  %v629_v26 = vrot.slane %v628_v23, 1 }
 0x350   :  { %v630_v27 = vadd.f32 %v629_v26, %v628_v23  ;;  %v631_v28 = vmul.f32 0.125, %v622_v25 }
 0x352   :  { %v632_v29 = vmul.f32 0.125, %v630_v27  ;;  %v633_v30 = vmul.f32 %v631_v28, %v631_v28 }
 0x354   :  { %v634_v31 = vsub.f32 %v632_v29, %v633_v30 }
 0x356   :  { %v635_v32 = vadd.f32 1e-05, %v634_v31 }
 0x358   :  { %1143 = vrsqrt.f32 %v635_v32 }
 0x362   :  { %v1144_v34 = vpop.eup %1143 }
 0x363   :  { %v637_v35 = vmul.f32 %v1144_v34, %v611_v33 }
 0x365   :  { %v638_v37 = vmul.f32 %v637_v35, %v631_v28  ;;  %v644_v38 = vrot.slane %v637_v35, %v1624_v24 }
 0x367   :  { %v639_v39 = vsub.f32 %v612_v36, %v638_v37  ;;  %v646_v40 = vmul.f32 %v644_v38, %v607_v10 }
 0x369   :  { %v651_v41 = vrot.slane %v639_v39, %v1624_v24 }
 0x36b   :  { %v653_v42 = vadd.f32 %v651_v41, %v646_v40 }
 0x36d   :  { %v654_v43 = vsel %vm615_vm4, %v653_v42, 0.0  ;;  %v664_v44 = vmul.f32 %v653_v42, %v653_v42 }
 0x36e   :  { %655 = vadd.xlane.f32.xlu1 %v654_v43 }
 0x36f   :  { %v665_v45 = vsel %vm615_vm4, %v664_v44, 0.0 }
 0x372   :  { %666 = vadd.xlane.f32.xlu1 %v665_v45 }
 0x3fb   :  { %v656_v46 = vpop.xlane.xlu1 %655 }
 0x3fc   :  { %v657_v47 = vrot.slane %v656_v46, 4 }
 0x3fe   :  { %v658_v48 = vadd.f32 %v657_v47, %v656_v46 }
 0x3ff   :  { %v667_v49 = vpop.xlane.xlu1 %666 }
 0x400   :  { %v659_v50 = vrot.slane %v658_v48, 2  ;;  %v668_v52 = vrot.slane %v667_v49, 4 }
 0x402   :  { %v669_v53 = vadd.f32 %v668_v52, %v667_v49  ;;  %v660_v54 = vadd.f32 %v659_v50, %v658_v48 }
 0x404   :  { %v670_v55 = vrot.slane %v669_v53, 2  ;;  %v661_v56 = vrot.slane %v660_v54, 1 }
 0x406   :  { %v671_v57 = vadd.f32 %v670_v55, %v669_v53  ;;  %v662_v24 = vadd.f32 %v661_v56, %v660_v54 }
 0x408   :  { %1128 = vpush %v662_v24  ;;  %v672_v58 = vrot.slane %v671_v57, 1 }
 0x40a   :  { %v673_v59 = vadd.f32 %v672_v58, %v671_v57 }
 0x40c   :  { %1130 = vpush %v673_v59 }
 0x439   :  { %s1129_s19 = spop %1128 }
 0x43a   :  { %s675_s20 = smul.f32 0.0052083335, %s1129_s19 }
 0x43c   :  { %s676_s21 = smul.f32 192.0, %s675_s20  ;;  %v693_v8 = vstv %s675_s20 }
 0x43d   :  { %s1131_s23 = spop %1130 }
 0x43e   :  { %s677_s22 = smul.f32 %s676_s21, %s675_s20 }
 0x440   :  { %s678_s24 = ssub.f32 %s1131_s23, %s677_s22 }
 0x442   :  { %s679_s0 = smax.f32 %s1174_s1, %s678_s24 }
 0x443   :  { %s680_s25 = smul.f32 0.005235602, %s679_s0 }
 0x445   :  { %v681_v63 = vstv %s680_s25 }
 0x446   :  { %1145 = vrsqrt.f32 %v681_v63  ;;  %vm684_vm5 = vcmp.eq.f32.partialorder %v681_v63, inf  ;;  %v687_v1 = vand.u32 2147483648, %v681_v63  ;;  %vm686_vm6 = vcmp.eq.f32.partialorder %v681_v63, 0.0 }
 0x450   :  { %v1146_v0 = vpop.eup %1145 }
 0x451   :  { %v683_v2 = vmul.f32 %v1146_v0, %v681_v63 }
 0x453   :  { %v685_v3 = vsel %vm684_vm5, %v681_v63, %v683_v2 }
 0x454   :  { %v688_v4 = vsel %vm686_vm6, %v687_v1, %v685_v3 }
 0x455   :  { %1132 = vpush %v688_v4 }
 0x486   :  { %s1133_s7 = spop %1132 }
 0x487   :  { %s690_s1 = smul.f32 %s1133_s7, %s1718_s12 }
 0x489   :  { %v691_v6 = vstv %s690_s1 }
 0x48a   :  { %v692_v7 = vmul.f32 %v691_v6, %v613_v5 }
 0x48c   :  { %v694_v9 = vadd.f32 %v693_v8, %v692_v7 }
 0x48e   :  { %v695_v10 = vadd.f32 %v694_v9, %v653_v42 }
 0x490   :  { %v696_v11 = vmax.f32 %v695_v10, 0.0 }
 0x492   :  { %988 = vmatmul.mubr.msk.f32.vlgmr.msra.gmra.mrb[4].mxu1 %vm615_vm4, %v696_v11 }
 0x565   :  { %v776_v13 = vpop.f32.mrb[4].mxu1 }
 0x566   :  { %v777_v14 = vadd.f32 %v796_v12, %v776_v13  ;;  %v989_v15 = vpop.f32.mrb[5].mxu1 }
 0x568   :  { %780 = vst [vmem:[#allocation4] sm:$0xff] %v777_v14 }
 0x569   :  { %1158 = shalt.err (!%p1155_p4)
}
 0x56a   :  { %s1159_s30 = scalar_lea.hbm %s1719_s13, 128 }
 0x56b   :  { %p1160_p5 = scmp.ne.s32.totalorder %s1719_s13, %s1159_s30  ;;  %p1163_p6 = scmp.lt.u32.totalorder %s1159_s30, %s1719_s13 }
 0x56d   :  { %p1165_p7 = pnand %p1163_p6, %p1160_p5 }
 0x56f   :  { %1168 = shalt.err (!%p1165_p7)
}
 0x570   :  { %790 = dma.vmem_to_hbm [thread:$0]  %s788_s9, 128, %s1719_s13, [#allocation5]  }
 0x571   :  { %1169 = dma.done.wait [#allocation5], 128  }
 0x572   :  { %1170 = vsyncadd [#allocation5], 4294967168 }
 0x573   :  { %794 = vsyncpa [#allocation5], 1 }

</bundles_post_ra>
